<compile_context>
chip_gen: v7x
topology: tpu7x:2x2x1
jax: 0.10.0
libtpu: 0.0.40
codegen_flags: <defaults>
</compile_context>

<pallas_src>
import jax
import jax.numpy as jnp
from jax.experimental import pallas as pl
from jax.experimental.pallas import tpu as pltpu


def _mlp_kernel(x_ref, w1_ref, b1_ref, w2_ref, b2_ref, w3_ref, b3_ref, o_ref):
    # Fused 3-layer MLP forward on one batch tile. Matmuls hit the MXU with f32
    # accumulation; bias-add + ReLU run on the VPU in f32; everything stays in VMEM.
    mm_dtype = w1_ref.dtype  # bf16 fast path or f32 exact path
    precision = jax.lax.Precision.HIGHEST if mm_dtype == jnp.float32 else None

    x = x_ref[...].astype(mm_dtype)  # only cast of x: in-kernel, on the VPU

    h1 = jnp.dot(x, w1_ref[...], preferred_element_type=jnp.float32,
                 precision=precision) + b1_ref[...]
    h1 = jnp.maximum(h1, 0.0)

    h2 = jnp.dot(h1.astype(mm_dtype), w2_ref[...], preferred_element_type=jnp.float32,
                 precision=precision) + b2_ref[...]
    h2 = jnp.maximum(h2, 0.0)

    out = jnp.dot(h2.astype(mm_dtype), w3_ref[...], preferred_element_type=jnp.float32,
                  precision=precision) + b3_ref[...]
    o_ref[...] = out.astype(o_ref.dtype)


def _choose_batch_tile(batch):
    """Tile selection (review feedback):
      * batch < 256: single grid step (whole batch per invocation).
      * batch >= 256: >= 2 'parallel' grid steps so both v7x TensorCores get
        work, with tiles as large as possible (cap 2048 rows) to amortize the
        ~0.35us/step grid overhead.  Tiles are rounded up to a sublane multiple
        (8) so the block shape is legal even when it isn't the full batch dim;
        any remainder is handled by a small row pad in the wrapper (no more
        collapsing to 8-row tiles for awkward batch sizes).
    """
    if batch < 256:
        return batch
    max_tile = 2048
    grid = max(2, -(-batch // max_tile))      # cdiv, but at least 2 steps
    tile = -(-batch // grid)                  # cdiv(batch, grid)
    tile = ((tile + 7) // 8) * 8              # sublane-align
    return tile


def prepare_params(params, mm_dtype=jnp.float32):
    """One-time parameter prep (hoisted out of net_forward per review).

    Casts matmul weights to mm_dtype (bf16 halves weight/x DMA bytes and is valid
    on v5e/v6e/v7x alike — the MXU takes bf16 operands natively); biases stay f32
    so the VPU bias+ReLU epilogue is exact f32 on every generation.
    """
    return {
        "w1": params["w1"].astype(mm_dtype), "b1": params["b1"].astype(jnp.float32),
        "w2": params["w2"].astype(mm_dtype), "b2": params["b2"].astype(jnp.float32),
        "w3": params["w3"].astype(mm_dtype), "b3": params["b3"].astype(jnp.float32),
    }


def _full_spec(a):
    # Grid-invariant weights/biases: full-array block, constant index_map.
    # (Constant block index => the pipeline never re-fetches them across steps.)
    n = a.ndim
    return pl.BlockSpec(a.shape, lambda i, n=n: (0,) * n)


def net_forward(x, params, *, batch_tile=None):
    """Fused MLP forward with a Pallas kernel.

    x: (B, n_feature) float32
    params: dict with w1 (F,128), w2 (128,64), w3 (64,O) in f32 or bf16
            (see prepare_params) and b1 (1,128), b2 (1,64), b3 (1,O) in f32.
    """
    w1, b1 = params["w1"], params["b1"]
    w2, b2 = params["w2"], params["b2"]
    w3, b3 = params["w3"], params["b3"]

    B, F = x.shape
    O = w3.shape[1]

    if batch_tile is None:
        batch_tile = _choose_batch_tile(B)
    grid_steps = pl.cdiv(B, batch_tile)
    B_pad = grid_steps * batch_tile
    x_in = x if B_pad == B else jnp.pad(x, ((0, B_pad - B), (0, 0)))

    # Advisory scheduling hint for XLA around the custom call.
    flops = 2 * B_pad * (F * 128 + 128 * 64 + 64 * O)
    bytes_accessed = (
        x_in.size * x_in.dtype.itemsize
        + sum(int(a.size) * a.dtype.itemsize for a in (w1, b1, w2, b2, w3, b3))
        + B_pad * O * 4
    )

    out = pl.pallas_call(
        _mlp_kernel,
        out_shape=jax.ShapeDtypeStruct((B_pad, O), jnp.float32),
        grid=(grid_steps,),
        in_specs=[
            pl.BlockSpec((batch_tile, F), lambda i: (i, 0)),  # x tile
            _full_spec(w1), _full_spec(b1),
            _full_spec(w2), _full_spec(b2),
            _full_spec(w3), _full_spec(b3),
        ],
        # Narrow output block: last dim equals the full array dim (legal block
        # shape); one masked vst per tile beats 32x padded-f32 writeback traffic.
        out_specs=pl.BlockSpec((batch_tile, O), lambda i: (i, 0)),
        compiler_params=pltpu.CompilerParams(
            dimension_semantics=("parallel",),
        ),
        cost_estimate=pl.CostEstimate(
            flops=flops, transcendentals=0, bytes_accessed=bytes_accessed),
    )(x_in, w1, b1, w2, b2, w3, b3)

    return out if B_pad == B else out[:B]


def init_params(key, n_feature, n_output):
    """PyTorch Linear default init: U(-1/sqrt(fan_in), 1/sqrt(fan_in))."""
    ks = jax.random.split(key, 6)

    def linear(kw, kb, fan_in, fan_out):
        bound = 1.0 / jnp.sqrt(jnp.float32(fan_in))
        w = jax.random.uniform(kw, (fan_in, fan_out), jnp.float32, -bound, bound)
        b = jax.random.uniform(kb, (1, fan_out), jnp.float32, -bound, bound)
        return w, b

    w1, b1 = linear(ks[0], ks[1], n_feature, 128)
    w2, b2 = linear(ks[2], ks[3], 128, 64)
    w3, b3 = linear(ks[4], ks[5], 64, n_output)
    return dict(w1=w1, b1=b1, w2=w2, b2=b2, w3=w3, b3=b3)


def _ref_forward(x, params):
    hi = jax.lax.Precision.HIGHEST
    h1 = jnp.maximum(jnp.dot(x, params["w1"], precision=hi) + params["b1"], 0.0)
    h2 = jnp.maximum(jnp.dot(h1, params["w2"], precision=hi) + params["b2"], 0.0)
    return jnp.dot(h2, params["w3"], precision=hi) + params["b3"]


def _standardize(x):
    # Glue from the reference script: x = (x - mean) / std over the batch axis.
    mean = jnp.mean(x, axis=0)
    std = jnp.std(x, axis=0)
    return (x - mean) / std


if __name__ == "__main__":
    key = jax.random.PRNGKey(0)
    k_x, k_p, k_x2 = jax.random.split(key, 3)

    batch, n_feature, n_output = 16, 16, 4

    x = _standardize(jax.random.normal(k_x, (batch, n_feature), jnp.float32))
    params = init_params(k_p, n_feature, n_output)

    # 1) Small-batch path: single grid step, f32 operands (exact check).
    out = jax.block_until_ready(net_forward(x, params))
    ref = _ref_forward(x, params)
    assert out.shape == (batch, n_output)
    assert jnp.allclose(out, ref, atol=2e-5, rtol=2e-5)

    # 2) bf16-operand fast path (valid on v5e/v6e/v7x): f32 accumulation,
    #    but h1/h2 are downcast too, so compare with a loose tolerance.
    params_bf16 = prepare_params(params, jnp.bfloat16)
    out_bf16 = jax.block_until_ready(net_forward(x, params_bf16))
    assert out_bf16.shape == (batch, n_output)
    assert jnp.allclose(out_bf16, ref, atol=5e-2, rtol=5e-2)

    # 3) Larger, non-divisible batch: exercises the >=2-step 'parallel' split
    #    (v7x megacore) and the cdiv/pad remainder handling.
    x_big = _standardize(jax.random.normal(k_x2, (300, n_feature), jnp.float32))
    out_big = jax.block_until_ready(net_forward(x_big, params))
    ref_big = _ref_forward(x_big, params)
    assert out_big.shape == (300, n_output)
    assert jnp.allclose(out_big, ref_big, atol=1e-4, rtol=1e-4)

    # TODO(synk): if tiles are ever raised past ~2048 rows and VMEM copies show up
    # in the MLIR, split the batch tile with an inner lax.fori_loop(unroll=True)
    # over 256-row sub-tiles to bound live activation ranges.

    print("KERNEL_OK")
</pallas_src>

<mosaic_0001>
module attributes {stable_mosaic.version = 11 : i64} {
  func.func @_mlp_kernel(%arg0: i32, %arg1: memref<16x16xf32, #tpu.memory_space<vmem>>, %arg2: memref<16x128xf32, #tpu.memory_space<vmem>>, %arg3: memref<1x128xf32, #tpu.memory_space<vmem>>, %arg4: memref<128x64xf32, #tpu.memory_space<vmem>>, %arg5: memref<1x64xf32, #tpu.memory_space<vmem>>, %arg6: memref<64x4xf32, #tpu.memory_space<vmem>>, %arg7: memref<1x4xf32, #tpu.memory_space<vmem>>, %arg8: memref<16x4xf32, #tpu.memory_space<vmem>>) attributes {dimension_semantics = [#tpu.dimension_semantics<parallel>], iteration_bounds = array<i64: 1>, scalar_prefetch = 0 : i64, scratch_operands = 0 : i64, tpu.core_type = #tpu.core_type<tc>, window_params = [{transform_indices = @transform_0, window_bounds = array<i64: 16, 16>}, {pipeline_mode = #tpu.pipeline_mode<synchronous>, transform_indices = @transform_1, window_bounds = array<i64: 16, 128>}, {pipeline_mode = #tpu.pipeline_mode<synchronous>, transform_indices = @transform_2, window_bounds = array<i64: 1, 128>}, {pipeline_mode = #tpu.pipeline_mode<synchronous>, transform_indices = @transform_3, window_bounds = array<i64: 128, 64>}, {pipeline_mode = #tpu.pipeline_mode<synchronous>, transform_indices = @transform_4, window_bounds = array<i64: 1, 64>}, {pipeline_mode = #tpu.pipeline_mode<synchronous>, transform_indices = @transform_5, window_bounds = array<i64: 64, 4>}, {pipeline_mode = #tpu.pipeline_mode<synchronous>, transform_indices = @transform_6, window_bounds = array<i64: 1, 4>}, {transform_indices = @transform_7, window_bounds = array<i64: 16, 4>}]} {
    %c0 = arith.constant 0 : index
    %c0_0 = arith.constant 0 : index
    %0 = vector.load %arg1[%c0, %c0_0] : memref<16x16xf32, #tpu.memory_space<vmem>>, vector<16x16xf32>
    %c0_1 = arith.constant 0 : index
    %c0_2 = arith.constant 0 : index
    %1 = vector.load %arg2[%c0_1, %c0_2] : memref<16x128xf32, #tpu.memory_space<vmem>>, vector<16x128xf32>
    %cst = arith.constant dense<0.000000e+00> : vector<16x128xf32>
    %2 = tpu.matmul %0, %1, %cst {dimension_numbers = #tpu.dot_dimension_numbers<[1], [0], [0], [1], [0, 0, 1, 1], [], []>, precision = #tpu.contract_precision<fp32>} : vector<16x16xf32>, vector<16x128xf32>, vector<16x128xf32> -> vector<16x128xf32>
    %c0_3 = arith.constant 0 : index
    %c0_4 = arith.constant 0 : index
    %3 = vector.load %arg3[%c0_3, %c0_4] : memref<1x128xf32, #tpu.memory_space<vmem>>, vector<1x128xf32>
    %4 = vector.broadcast %3 : vector<1x128xf32> to vector<16x128xf32>
    %5 = arith.addf %2, %4 : vector<16x128xf32>
    %cst_5 = arith.constant 0.000000e+00 : f32
    %6 = vector.broadcast %cst_5 : f32 to vector<16x128xf32>
    %7 = arith.maximumf %5, %6 : vector<16x128xf32>
    %c0_6 = arith.constant 0 : index
    %c0_7 = arith.constant 0 : index
    %8 = vector.load %arg4[%c0_6, %c0_7] : memref<128x64xf32, #tpu.memory_space<vmem>>, vector<128x64xf32>
    %cst_8 = arith.constant dense<0.000000e+00> : vector<16x64xf32>
    %9 = tpu.matmul %7, %8, %cst_8 {dimension_numbers = #tpu.dot_dimension_numbers<[1], [0], [0], [1], [0, 0, 1, 1], [], []>, precision = #tpu.contract_precision<fp32>} : vector<16x128xf32>, vector<128x64xf32>, vector<16x64xf32> -> vector<16x64xf32>
    %c0_9 = arith.constant 0 : index
    %c0_10 = arith.constant 0 : index
    %10 = vector.load %arg5[%c0_9, %c0_10] : memref<1x64xf32, #tpu.memory_space<vmem>>, vector<1x64xf32>
    %11 = vector.broadcast %10 : vector<1x64xf32> to vector<16x64xf32>
    %12 = arith.addf %9, %11 : vector<16x64xf32>
    %cst_11 = arith.constant 0.000000e+00 : f32
    %13 = vector.broadcast %cst_11 : f32 to vector<16x64xf32>
    %14 = arith.maximumf %12, %13 : vector<16x64xf32>
    %c0_12 = arith.constant 0 : index
    %c0_13 = arith.constant 0 : index
    %15 = vector.load %arg6[%c0_12, %c0_13] : memref<64x4xf32, #tpu.memory_space<vmem>>, vector<64x4xf32>
    %cst_14 = arith.constant dense<0.000000e+00> : vector<16x4xf32>
    %16 = tpu.matmul %14, %15, %cst_14 {dimension_numbers = #tpu.dot_dimension_numbers<[1], [0], [0], [1], [0, 0, 1, 1], [], []>, precision = #tpu.contract_precision<fp32>} : vector<16x64xf32>, vector<64x4xf32>, vector<16x4xf32> -> vector<16x4xf32>
    %c0_15 = arith.constant 0 : index
    %c0_16 = arith.constant 0 : index
    %17 = vector.load %arg7[%c0_15, %c0_16] : memref<1x4xf32, #tpu.memory_space<vmem>>, vector<1x4xf32>
    %18 = vector.broadcast %17 : vector<1x4xf32> to vector<16x4xf32>
    %19 = arith.addf %16, %18 : vector<16x4xf32>
    %c0_17 = arith.constant 0 : index
    %c0_18 = arith.constant 0 : index
    %20 = vector.load %arg8[%c0_17, %c0_18] : memref<16x4xf32, #tpu.memory_space<vmem>>, vector<16x4xf32>
    tpu.vector_store %arg8[%c0_17, %c0_18], %19 {strides = array<i32>} : memref<16x4xf32, #tpu.memory_space<vmem>>, vector<16x4xf32>,
    return
  }
  func.func @transform_0(%arg0: i32) -> (i32, i32) {
    %c0_i32 = arith.constant 0 : i32
    %c0_i32_0 = arith.constant 0 : i32
    return %arg0, %c0_i32 : i32, i32
  }
  func.func @transform_1(%arg0: i32) -> (i32, i32) {
    %c0_i32 = arith.constant 0 : i32
    %c0_i32_0 = arith.constant 0 : i32
    %c0_i32_1 = arith.constant 0 : i32
    return %c0_i32, %c0_i32_0 : i32, i32
  }
  func.func @transform_2(%arg0: i32) -> (i32, i32) {
    %c0_i32 = arith.constant 0 : i32
    %c0_i32_0 = arith.constant 0 : i32
    %c0_i32_1 = arith.constant 0 : i32
    return %c0_i32, %c0_i32_0 : i32, i32
  }
  func.func @transform_3(%arg0: i32) -> (i32, i32) {
    %c0_i32 = arith.constant 0 : i32
    %c0_i32_0 = arith.constant 0 : i32
    %c0_i32_1 = arith.constant 0 : i32
    return %c0_i32, %c0_i32_0 : i32, i32
  }
  func.func @transform_4(%arg0: i32) -> (i32, i32) {
    %c0_i32 = arith.constant 0 : i32
    %c0_i32_0 = arith.constant 0 : i32
    %c0_i32_1 = arith.constant 0 : i32
    return %c0_i32, %c0_i32_0 : i32, i32
  }
  func.func @transform_5(%arg0: i32) -> (i32, i32) {
    %c0_i32 = arith.constant 0 : i32
    %c0_i32_0 = arith.constant 0 : i32
    %c0_i32_1 = arith.constant 0 : i32
    return %c0_i32, %c0_i32_0 : i32, i32
  }
  func.func @transform_6(%arg0: i32) -> (i32, i32) {
    %c0_i32 = arith.constant 0 : i32
    %c0_i32_0 = arith.constant 0 : i32
    %c0_i32_1 = arith.constant 0 : i32
    return %c0_i32, %c0_i32_0 : i32, i32
  }
  func.func @transform_7(%arg0: i32) -> (i32, i32) {
    %c0_i32 = arith.constant 0 : i32
    %c0_i32_0 = arith.constant 0 : i32
    return %arg0, %c0_i32 : i32, i32
  }
}

</mosaic_0001>

<bundles_post_ra>
// kernel: tpu_custom_call.1
= control target key start
LH: loop header
LB: loop body
LE: loop exit
PB: predicated region body
PF: predicated region fallthrough
CT: control target
= control target key end

     0   :  { %vm37_vm0 = vcmask 130048   ;;  %vm1272_vm1 = vcmask 523264   ;;  %vm1859_vm2 = vcmask 31744   ;;  %s3314_s1 = inlined_call_operand.vmem [shape: f32[16,128], index: 1, kind: input, shape index: {}]   ;;  %s3315_s0 = inlined_call_operand.vmem [shape: f32[16,16], index: 0, kind: input, shape index: {}]   ;;  %s3316_s3 = inlined_call_operand.vmem [shape: f32[128,64], index: 3, kind: input, shape index: {}]   ;;  %s3317_s2 = inlined_call_operand.vmem [shape: f32[1,128], index: 2, kind: input, shape index: {}]   ;;  %s3318_s5 = inlined_call_operand.vmem [shape: f32[64,4], index: 5, kind: input, shape index: {}]   ;;  %s3319_s4 = inlined_call_operand.vmem [shape: f32[1,64], index: 4, kind: input, shape index: {}]   ;;  %s3320_s6 = inlined_call_operand.vmem [shape: f32[1,4], index: 6, kind: input, shape index: {}]   ;;  %s3321_s7 = inlined_call_operand.vmem [shape: f32[16,4], index: 7, kind: output, shape index: {}]  }
   0x1   :  { %v28_v0 = vld [vmem:[%s3314_s1] sm:$0xff]  ;;  %v29_v1 = vld [vmem:[%s3314_s1 + $0x8] sm:$0xff]  ;;  %v2852_v17 = vld [vmem:[%s3316_s3 + $0x10] sm:$0xff] }
   0x2   :  { %v26_v2 = vld [vmem:[%s3315_s0] sm:$0xff]  ;;  %v45_v3 = vand.u32 4294901760, %v28_v0  ;;  %v48_v4 = vand.u32 4294901760, %v29_v1  ;;  %v27_v5 = vld [vmem:[%s3315_s0 + $0x8] sm:$0xff]  ;;  %v2876_v24 = vld [vmem:[%s3316_s3 + $0x18] sm:$0xff]  ;;  %v578_v28 = vand.u32 4294901760, %v2852_v17 }
   0x3   :  { %v39_v6 = vsel %vm37_vm0, %v26_v2, 0  ;;  %v2830_v7 = vld [vmem:[%s3316_s3] sm:$0xff]  ;;  %v2835_v8 = vld [vmem:[%s3316_s3 + $0x8] sm:$0xff]  ;;  %v42_v9 = vsel %vm37_vm0, %v27_v5, 0  ;;  %v581_v35 = vand.u32 4294901760, %v2876_v24  ;;  %v2921_v42 = vld [vmem:[%s3316_s3 + $0x30] sm:$0xff] }
   0x4   :  { %v2837_v10 = vand.u32 4294901760, %v39_v6  ;;  %v572_v11 = vand.u32 4294901760, %v2830_v7  ;;  %v575_v12 = vand.u32 4294901760, %v2835_v8  ;;  %v2841_v13 = vpack.c.bf16 %v48_v4, %v45_v3  ;;  %v2911_v40 = vld [vmem:[%s3316_s3 + $0x20] sm:$0xff]  ;;  %v2916_v41 = vld [vmem:[%s3316_s3 + $0x28] sm:$0xff]  ;;  %v2928_v47 = vld [vmem:[%s3316_s3 + $0x38] sm:$0xff] }
   0x5   :  { %v2843_v14 = vand.u32 4294901760, %v42_v9  ;;  %v2845_v15 = vsub.f32 %v28_v0, %v45_v3  ;;  %v2847_v16 = vsub.f32 %v29_v1, %v48_v4  ;;  %v2906_v39 = vsub.f32 %v2852_v17, %v578_v28  ;;  %v2933_v48 = vld [vmem:[%s3316_s3 + $0x40] sm:$0xff]  ;;  %v2944_v53 = vld [vmem:[%s3316_s3 + $0x48] sm:$0xff]  ;;  %v2978_v4 = vld [vmem:[%s3316_s3 + $0x50] sm:$0xff] }
   0x6   :  { %v2855_v18 = vsub.f32 %v39_v6, %v2837_v10  ;;  %v2860_v19 = vsub.f32 %v2830_v7, %v572_v11  ;;  %v2865_v20 = vsub.f32 %v2835_v8, %v575_v12  ;;  %2428 = vmatprep.subr.bf16.mxu0 %v2841_v13  ;;  %v2939_v52 = vsub.f32 %v2876_v24, %v581_v35 }
   0x7   :  { %v2869_v21 = vsub.f32 %v42_v9, %v2843_v14  ;;  %v134_v22 = vand.u32 4294901760, %v2845_v15  ;;  %v141_v23 = vand.u32 4294901760, %v2847_v16  ;;  %2430 = vmatpush3.bf16.msra.mxu0 %v2841_v13  ;;  %v2435_v44 = vpack.c.bf16 %v2847_v16, %v2845_v15 }
   0x8   :  { %v113_v25 = vand.u32 4294901760, %v2855_v18  ;;  %v675_v26 = vand.u32 4294901760, %v2860_v19  ;;  %v682_v27 = vand.u32 4294901760, %v2865_v20  ;;  %v3329_v51 = vand.u32 4294901760, %v2906_v39 }
   0x9   :  { %v123_v29 = vand.u32 4294901760, %v2869_v21  ;;  %v135_v30 = vsub.f32 %v2845_v15, %v134_v22  ;;  %v142_v31 = vsub.f32 %v2847_v16, %v141_v23  ;;  %v584_v55 = vand.u32 4294901760, %v2911_v40 }
   0xa   :  { %v114_v32 = vsub.f32 %v2855_v18, %v113_v25  ;;  %v676_v33 = vsub.f32 %v2860_v19, %v675_v26  ;;  %v683_v34 = vsub.f32 %v2865_v20, %v682_v27  ;;  %v587_v56 = vand.u32 4294901760, %v2916_v41 }
   0xb   :  { %v124_v36 = vsub.f32 %v2869_v21, %v123_v29  ;;  %v136_v37 = vand.u32 4294901760, %v135_v30  ;;  %v143_v38 = vand.u32 4294901760, %v142_v31  ;;  %v590_v57 = vand.u32 4294901760, %v2921_v42 }
   0xc   :  { %v115_v43 = vand.u32 4294901760, %v114_v32  ;;  %v677_v45 = vand.u32 4294901760, %v676_v33  ;;  %v684_v46 = vand.u32 4294901760, %v683_v34  ;;  %v690_v58 = vsub.f32 %v2906_v39, %v3329_v51  ;;  %v3001_v34 = vld [vmem:[%s3316_s3 + $0x58] sm:$0xff] }
   0xd   :  { %v125_v49 = vand.u32 4294901760, %v124_v36  ;;  %v2431_v50 = vpack.c.bf16 %v143_v38, %v136_v37  ;;  %v3328_v59 = vand.u32 4294901760, %v2939_v52  ;;  %v593_v60 = vand.u32 4294901760, %v2928_v47 }
   0xe   :  { %2065 = vmatprep.mubr.f32.mxu0 %v115_v43  ;;  %v2483_v54 = vpack.c.bf16 %v684_v46, %v677_v45  ;;  %v596_v61 = vand.u32 4294901760, %v2933_v48  ;;  %v2959_v62 = vsub.f32 %v2911_v40, %v584_v55  ;;  %v2964_v63 = vsub.f32 %v2916_v41, %v587_v56 }
   0xf   :  { %2066 = vmatmul.mubr.f32.vlgmr.msra.gmra.mrb[0].mxu0 %v125_v49  ;;  %2432 = vmatprep.subr.bf16.mxu0 %v2431_v50  ;;  %v599_v0 = vand.u32 4294901760, %v2944_v53  ;;  %v691_v1 = vand.u32 4294901760, %v690_v58  ;;  %v697_v2 = vsub.f32 %v2939_v52, %v3328_v59  ;;  %v2973_v3 = vsub.f32 %v2921_v42, %v590_v57 }
  0x10   :  { %2434 = vmatpush3.bf16.msra.mxu0 %v2431_v50  ;;  %2072 = vmatprep.mubr.f32.mxu0 %v2837_v10  ;;  %v3327_v5 = vand.u32 4294901760, %v2959_v62  ;;  %v3322_v6 = vand.u32 4294901760, %v2964_v63  ;;  %v2985_v9 = vsub.f32 %v2928_v47, %v593_v60  ;;  %v2991_v32 = vsub.f32 %v2933_v48, %v596_v61 }
  0x11   :  { %2436 = vmatprep.subr.bf16.mxu0 %v2435_v44  ;;  %2484 = vmatprep.subr.bf16.mxu1 %v2483_v54  ;;  %v698_v30 = vand.u32 4294901760, %v697_v2  ;;  %v3323_v31 = vand.u32 4294901760, %v2973_v3  ;;  %v2996_v33 = vsub.f32 %v2944_v53, %v599_v0  ;;  %v602_v43 = vand.u32 4294901760, %v2978_v4 }
  0x12   :  { %2486 = vmatpush3.bf16.msra.mxu1 %v2483_v54  ;;  %v704_v36 = vsub.f32 %v2959_v62, %v3327_v5  ;;  %v711_v37 = vsub.f32 %v2964_v63, %v3322_v6  ;;  %v3324_v38 = vand.u32 4294901760, %v2985_v9  ;;  %v3325_v49 = vand.u32 4294901760, %v2991_v32 }
  0x13   :  { %v2487_v45 = vpack.c.bf16 %v698_v30, %v691_v1  ;;  %v718_v46 = vsub.f32 %v2973_v3, %v3323_v31  ;;  %v3326_v50 = vand.u32 4294901760, %v2996_v33  ;;  %v605_v6 = vand.u32 4294901760, %v3001_v34 }
  0x14   :  { %v705_v54 = vand.u32 4294901760, %v704_v36  ;;  %v712_v58 = vand.u32 4294901760, %v711_v37  ;;  %v725_v2 = vsub.f32 %v2985_v9, %v3324_v38  ;;  %v732_v30 = vsub.f32 %v2991_v32, %v3325_v49 }
  0x15   :  { %2488 = vmatprep.subr.bf16.mxu1 %v2487_v45  ;;  %v719_v1 = vand.u32 4294901760, %v718_v46  ;;  %v739_v31 = vsub.f32 %v2996_v33, %v3326_v50  ;;  %v3030_v36 = vsub.f32 %v2978_v4, %v602_v43  ;;  %v3034_v46 = vsub.f32 %v3001_v34, %v605_v6 }
  0x16   :  { %v2491_v37 = vpack.c.bf16 %v712_v58, %v705_v54  ;;  %v726_v38 = vand.u32 4294901760, %v725_v2  ;;  %2490 = vmatpush3.bf16.msra.mxu1 %v2487_v45  ;;  %v733_v5 = vand.u32 4294901760, %v732_v30  ;;  %v2443_v45 = vpack.c.bf16 %v141_v23, %v134_v22  ;;  %v562_v22 = vld [vmem:[%s3316_s3 + $0x70] sm:$0xff]  ;;  %v563_v23 = vld [vmem:[%s3316_s3 + $0x78] sm:$0xff]  ;;  %v1866_v2 = vld [vmem:[%s3317_s2] ss:$0 sm:$0xff] }
  0x17   :  { %2073 = vmatmul.mubr.f32.vlgmr.msra.gmra.mrb[0].mxu0 %v2843_v14  ;;  %v745_v49 = vand.u32 4294901760, %v3030_v36  ;;  %v740_v59 = vand.u32 4294901760, %v739_v31  ;;  %v752_v51 = vand.u32 4294901760, %v3034_v46  ;;  %v3061_v15 = vpack.c.bf16 %v575_v12, %v572_v11  ;;  %v560_v12 = vld [vmem:[%s3316_s3 + $0x60] sm:$0xff] }
  0x18   :  { %2438 = vmatpush3.bf16.msra.mxu0 %v2435_v44  ;;  %2079 = vmatprep.mubr.f32.mxu0 %v2855_v18  ;;  %v2495_v50 = vpack.c.bf16 %v726_v38, %v719_v1  ;;  %v3071_v16 = vpack.c.bf16 %v581_v35, %v578_v28  ;;  %v3079_v7 = vpack.c.bf16 %v587_v56, %v584_v55  ;;  %v614_v28 = vand.u32 4294901760, %v562_v22 }
  0x19   :  { %2440 = vmatprep.subr.bf16.mxu0 %v2841_v13  ;;  %2492 = vmatprep.subr.bf16.mxu1 %v2491_v37  ;;  %v746_v44 = vsub.f32 %v3030_v36, %v745_v49  ;;  %v753_v34 = vsub.f32 %v3034_v46, %v752_v51  ;;  %v2499_v38 = vpack.c.bf16 %v740_v59, %v733_v5 }
  0x1a   :  { %2494 = vmatpush3.bf16.msra.mxu1 %v2491_v37  ;;  %v3087_v8 = vpack.c.bf16 %v593_v60, %v590_v57  ;;  %v3101_v11 = vpack.c.bf16 %v605_v6, %v602_v43  ;;  %v3131_v41 = vsub.f32 %v562_v22, %v614_v28  ;;  %v2515_v4 = vpack.c.bf16 %v2865_v20, %v2860_v19 }
  0x1b   :  { %2496 = vmatprep.subr.bf16.mxu1 %v2495_v50  ;;  %v747_v54 = vand.u32 4294901760, %v746_v44  ;;  %v754_v31 = vand.u32 4294901760, %v753_v34  ;;  %v2523_v22 = vpack.c.bf16 %v2964_v63, %v2959_v62  ;;  %v3333_v19 = vand.u32 4294901760, %v2964_v63 }
  0x1c   :  { %v773_v53 = vand.u32 4294901760, %v3131_v41  ;;  %v3334_v20 = vand.u32 4294901760, %v2973_v3 }
  0x1d   :  { %v2503_v58 = vpack.c.bf16 %v754_v31, %v747_v54 }
  0x1e   :  { %2498 = vmatpush3.bf16.msra.mxu1 %v2495_v50  ;;  %v774_v57 = vsub.f32 %v3131_v41, %v773_v53 }
  0x1f   :  { %2080 = vmatmul.mubr.f32.vlgmr.msra.gmra.mrb[0].mxu0 %v2869_v21  ;;  %2500 = vmatprep.subr.bf16.mxu1 %v2499_v38 }
  0x20   :  { %2442 = vmatpush3.bf16.msra.mxu0 %v2841_v13  ;;  %2086 = vmatprep.mubr.f32.mxu0 %v113_v25  ;;  %v775_v60 = vand.u32 4294901760, %v774_v57  ;;  %v3331_v57 = vand.u32 4294901760, %v2939_v52 }
  0x21   :  { %2444 = vmatprep.subr.bf16.mxu0 %v2443_v45 }
  0x22   :  { %2502 = vmatpush3.bf16.msra.mxu1 %v2499_v38 }
  0x23   :  { %2504 = vmatprep.subr.bf16.mxu1 %v2503_v58 }
  0x26   :  { %2506 = vmatpush3.bf16.msra.mxu1 %v2503_v58  ;;  %v2519_v58 = vpack.c.bf16 %v2939_v52, %v2906_v39  ;;  %v3337_v52 = vand.u32 4294901760, %v2996_v33 }
  0x27   :  { %2087 = vmatmul.mubr.f32.vlgmr.msra.gmra.mrb[0].mxu0 %v123_v29  ;;  %v617_v29 = vand.u32 4294901760, %v563_v23 }
  0x28   :  { %2446 = vmatpush3.bf16.msra.mxu0 %v2443_v45  ;;  %2093 = vmatprep.mubr.f32.mxu0 %v2837_v10 }
  0x29   :  { %2448 = vmatprep.subr.bf16.mxu0 %v2841_v13  ;;  %v3133_v42 = vsub.f32 %v563_v23, %v617_v29  ;;  %v3149_v6 = vpack.c.bf16 %v617_v29, %v614_v28 }
  0x2b   :  { %v780_v55 = vand.u32 4294901760, %v3133_v42  ;;  %v2543_v50 = vpack.c.bf16 %v3133_v42, %v3131_v41 }
  0x2d   :  { %v781_v59 = vsub.f32 %v3133_v42, %v780_v55  ;;  %v1263_v42 = vld [vmem:[%s3318_s5 + $0x30] sm:$0xff] }
  0x2f   :  { %2094 = vmatmul.mubr.f32.vlgmr.msra.gmra.mrb[0].mxu0 %v2843_v14 }
  0x30   :  { %2450 = vmatpush3.bf16.msra.mxu0 %v2841_v13  ;;  %2100 = vmatprep.mubr.f32.mxu0 %v2837_v10  ;;  %v3095_v10 = vpack.c.bf16 %v599_v0, %v596_v61  ;;  %v561_v13 = vld [vmem:[%s3316_s3 + $0x68] sm:$0xff]  ;;  %v782_v61 = vand.u32 4294901760, %v781_v59 }
  0x31   :  { %2452 = vmatprep.subr.bf16.mxu0 %v3061_v15  ;;  %v611_v17 = vand.u32 4294901760, %v561_v13 }
  0x32   :  { %v2511_v0 = vpack.c.bf16 %v782_v61, %v775_v60  ;;  %v3332_v60 = vand.u32 4294901760, %v2959_v62  ;;  %v2599_v62 = vpack.c.bf16 %v752_v51, %v745_v49  ;;  %v1257_v51 = vld [vmem:[%s3318_s5] sm:$0xff] }
  0x33   :  { %v3115_v21 = vsub.f32 %v561_v13, %v611_v17 }
  0x34   :  { %v2587_v61 = vpack.c.bf16 %v3333_v19, %v3332_v60 }
  0x35   :  { %v766_v25 = vand.u32 4294901760, %v3115_v21 }
  0x37   :  { %2101 = vmatmul.mubr.f32.vlgmr.msra.gmra.mrb[0].mxu0 %v2843_v14  ;;  %v608_v14 = vand.u32 4294901760, %v560_v12  ;;  %v767_v40 = vsub.f32 %v3115_v21, %v766_v25 }
  0x38   :  { %2454 = vmatpush3.bf16.msra.mxu0 %v3061_v15 }
  0x39   :  { %2456 = vmatprep.subr.bf16.mxu0 %v3071_v16  ;;  %v3113_v18 = vsub.f32 %v560_v12, %v608_v14  ;;  %v768_v48 = vand.u32 4294901760, %v767_v40  ;;  %v3145_v5 = vpack.c.bf16 %v611_v17, %v608_v14  ;;  %v2531_v40 = vpack.c.bf16 %v2996_v33, %v2991_v32 }
  0x3b   :  { %v759_v24 = vand.u32 4294901760, %v3113_v18  ;;  %v2539_v43 = vpack.c.bf16 %v3115_v21, %v3113_v18 }
  0x3c   :  { %2458 = vmatpush3.bf16.msra.mxu0 %v3071_v16 }
  0x3d   :  { %2460 = vmatprep.subr.bf16.mxu0 %v3079_v7  ;;  %v760_v35 = vsub.f32 %v3113_v18, %v759_v24  ;;  %v2603_v63 = vpack.c.bf16 %v766_v25, %v759_v24 }
  0x3f   :  { %v761_v47 = vand.u32 4294901760, %v760_v35  ;;  %v2527_v35 = vpack.c.bf16 %v2985_v9, %v2973_v3  ;;  %v2607_v3 = vpack.c.bf16 %v780_v55, %v773_v53  ;;  %v1264_v53 = vld [vmem:[%s3318_s5 + $0x38] sm:$0xff] }
  0x40   :  { %2462 = vmatpush3.bf16.msra.mxu0 %v3079_v7 }
  0x41   :  { %2464 = vmatprep.subr.bf16.mxu0 %v3087_v8  ;;  %v2507_v56 = vpack.c.bf16 %v768_v48, %v761_v47  ;;  %v2535_v47 = vpack.c.bf16 %v3034_v46, %v3030_v36  ;;  %v2579_v48 = vpack.c.bf16 %v682_v27, %v675_v26  ;;  %v3335_v26 = vand.u32 4294901760, %v2985_v9  ;;  %v1258_v9 = vld [vmem:[%s3318_s5 + $0x8] sm:$0xff]  ;;  %v1259_v36 = vld [vmem:[%s3318_s5 + $0x10] sm:$0xff]  ;;  %v1260_v46 = vld [vmem:[%s3318_s5 + $0x18] sm:$0xff] }
  0x42   :  { %v1283_v33 = vand.u32 4294901760, %v1258_v9 }
  0x43   :  { %2508 = vmatprep.subr.bf16.mxu1 %v2507_v56  ;;  %v2591_v27 = vpack.c.bf16 %v3335_v26, %v3334_v20 }
  0x44   :  { %2466 = vmatpush3.bf16.msra.mxu0 %v3087_v8  ;;  %2510 = vmatpush3.bf16.msra.mxu1 %v2507_v56  ;;  %v3330_v56 = vand.u32 4294901760, %v2906_v39  ;;  %v3336_v39 = vand.u32 4294901760, %v2991_v32  ;;  %v1280_v32 = vand.u32 4294901760, %v1257_v51  ;;  %v1381_v25 = vsub.f32 %v1258_v9, %v1283_v33 }
  0x45   :  { %2468 = vmatprep.subr.bf16.mxu0 %v3095_v10  ;;  %2512 = vmatprep.subr.bf16.mxu1 %v2511_v0 }
  0x46   :  { %v2583_v59 = vpack.c.bf16 %v3331_v57, %v3330_v56  ;;  %v3252_v49 = vpack.c.bf16 %v1283_v33, %v1280_v32  ;;  %v1374_v24 = vsub.f32 %v1257_v51, %v1280_v32  ;;  %v1867_v32 = vld [vmem:[%s3319_s4] ss:$0 sm:$0xff] }
  0x48   :  { %2470 = vmatpush3.bf16.msra.mxu0 %v3095_v10  ;;  %2514 = vmatpush3.bf16.msra.mxu1 %v2511_v0  ;;  %v2595_v0 = vpack.c.bf16 %v3337_v52, %v3336_v39  ;;  %v2675_v39 = vpack.c.bf16 %v1381_v25, %v1374_v24 }
  0x49   :  { %2472 = vmatprep.subr.bf16.mxu0 %v3101_v11  ;;  %2516 = vmatprep.subr.bf16.mxu1 %v2515_v4 }
  0x4c   :  { %2474 = vmatpush3.bf16.msra.mxu0 %v3101_v11 }
  0x4d   :  { %2476 = vmatprep.subr.bf16.mxu0 %v3145_v5 }
  0x50   :  { %2478 = vmatpush3.bf16.msra.mxu0 %v3145_v5 }
  0x51   :  { %2480 = vmatprep.subr.bf16.mxu0 %v3149_v6 }
  0x54   :  { %2482 = vmatpush3.bf16.msra.mxu0 %v3149_v6 }
  0x55   :  { %2644 = vmatprep.subr.bf16.mxu0 %v3252_v49 }
 0x10a   :  { %v2102_v1 = vpop.f32.mrb[0].mxu0 }
 0x10b   :  { %v2739_v30 = vadd.f32 %v2102_v1, %v1866_v2  ;;  %v536_v37 = vpop.f32.mrb[1].mxu0 }
 0x10c   :  { %v2740_v44 = vadd.f32 %v1866_v2, %v536_v37 }
 0x10d   :  { %v547_v34 = vmax.f32 %v2739_v30, 0.0 }
 0x10e   :  { %v546_v45 = vmax.f32 %v2740_v44, 0.0 }
 0x10f   :  { %v3160_v38 = vand.u32 4294901760, %v547_v34 }
 0x110   :  { %v3162_v54 = vand.u32 4294901760, %v546_v45 }
 0x111   :  { %v663_v31 = vsub.f32 %v547_v34, %v3160_v38 }
 0x112   :  { %v653_v12 = vsub.f32 %v546_v45, %v3162_v54  ;;  %2170 = vmatprep.mubr.f32.mxu1 %v3162_v54 }
 0x113   :  { %v664_v13 = vand.u32 4294901760, %v663_v31  ;;  %2171 = vmatmul.mubr.f32.vlgmr.msra.gmra.mrb[0].mxu1 %v3160_v38 }
 0x114   :  { %2518 = vmatpush3.bf16.msra.mxu1 %v2515_v4  ;;  %2205 = vmatprep.mubr.f32.mxu1 %v653_v12  ;;  %v654_v14 = vand.u32 4294901760, %v653_v12  ;;  %v1298_v4 = vand.u32 4294901760, %v1263_v42 }
 0x115   :  { %v665_v17 = vsub.f32 %v663_v31, %v664_v13  ;;  %2520 = vmatprep.subr.bf16.mxu1 %v2519_v58 }
 0x116   :  { %v655_v23 = vsub.f32 %v653_v12, %v654_v14 }
 0x117   :  { %v666_v29 = vand.u32 4294901760, %v665_v17 }
 0x118   :  { %2522 = vmatpush3.bf16.msra.mxu1 %v2519_v58  ;;  %v656_v28 = vand.u32 4294901760, %v655_v23 }
 0x119   :  { %2524 = vmatprep.subr.bf16.mxu1 %v2523_v22 }
 0x11a   :  { %2135 = vmatprep.mubr.f32.mxu0 %v656_v28 }
 0x11b   :  { %2136 = vmatmul.mubr.f32.vlgmr.msra.gmra.mrb[2].mxu0 %v666_v29 }
 0x11c   :  { %2526 = vmatpush3.bf16.msra.mxu1 %v2523_v22  ;;  %2646 = vmatpush3.bf16.msra.mxu0 %v3252_v49 }
 0x11d   :  { %2528 = vmatprep.subr.bf16.mxu1 %v2527_v35 }
 0x120   :  { %2530 = vmatpush3.bf16.msra.mxu1 %v2527_v35  ;;  %v1416_v35 = vsub.f32 %v1263_v42, %v1298_v4 }
 0x121   :  { %2532 = vmatprep.subr.bf16.mxu1 %v2531_v40 }
 0x122   :  { %v1417_v56 = vand.u32 4294901760, %v1416_v35 }
 0x124   :  { %2534 = vmatpush3.bf16.msra.mxu1 %v2531_v40  ;;  %v1418_v60 = vsub.f32 %v1416_v35, %v1417_v56 }
 0x125   :  { %2536 = vmatprep.subr.bf16.mxu1 %v2535_v47 }
 0x126   :  { %v1419_v20 = vand.u32 4294901760, %v1418_v60 }
 0x128   :  { %2538 = vmatpush3.bf16.msra.mxu1 %v2535_v47 }
 0x129   :  { %2540 = vmatprep.subr.bf16.mxu1 %v2539_v43 }
 0x12c   :  { %2542 = vmatpush3.bf16.msra.mxu1 %v2539_v43  ;;  %v1382_v43 = vand.u32 4294901760, %v1381_v25 }
 0x12d   :  { %2544 = vmatprep.subr.bf16.mxu1 %v2543_v50 }
 0x12e   :  { %v1383_v1 = vsub.f32 %v1381_v25, %v1382_v43 }
 0x130   :  { %2546 = vmatpush3.bf16.msra.mxu1 %v2543_v50  ;;  %v1384_v34 = vand.u32 4294901760, %v1383_v1 }
 0x131   :  { %2548 = vmatprep.subr.bf16.mxu1 %v3061_v15 }
 0x133   :  { %2206 = vmatmul.mubr.f32.vlgmr.msra.gmra.mrb[0].mxu1 %v663_v31 }
 0x134   :  { %2550 = vmatpush3.bf16.msra.mxu1 %v3061_v15  ;;  %2240 = vmatprep.mubr.f32.mxu1 %v654_v14 }
 0x135   :  { %2552 = vmatprep.subr.bf16.mxu1 %v3071_v16 }
 0x138   :  { %2554 = vmatpush3.bf16.msra.mxu1 %v3071_v16 }
 0x139   :  { %2556 = vmatprep.subr.bf16.mxu1 %v3079_v7 }
 0x13c   :  { %2558 = vmatpush3.bf16.msra.mxu1 %v3079_v7 }
 0x13d   :  { %2560 = vmatprep.subr.bf16.mxu1 %v3087_v8 }
 0x140   :  { %2562 = vmatpush3.bf16.msra.mxu1 %v3087_v8 }
 0x141   :  { %2564 = vmatprep.subr.bf16.mxu1 %v3095_v10 }
 0x144   :  { %2566 = vmatpush3.bf16.msra.mxu1 %v3095_v10 }
 0x145   :  { %2568 = vmatprep.subr.bf16.mxu1 %v3101_v11 }
 0x148   :  { %2570 = vmatpush3.bf16.msra.mxu1 %v3101_v11 }
 0x149   :  { %2572 = vmatprep.subr.bf16.mxu1 %v3145_v5 }
 0x14c   :  { %2574 = vmatpush3.bf16.msra.mxu1 %v3145_v5 }
 0x14d   :  { %2576 = vmatprep.subr.bf16.mxu1 %v3149_v6 }
 0x150   :  { %2578 = vmatpush3.bf16.msra.mxu1 %v3149_v6 }
 0x151   :  { %2580 = vmatprep.subr.bf16.mxu1 %v2579_v48 }
 0x153   :  { %2241 = vmatmul.mubr.f32.vlgmr.msra.gmra.mrb[0].mxu1 %v664_v13 }
 0x154   :  { %2582 = vmatpush3.bf16.msra.mxu1 %v2579_v48  ;;  %2275 = vmatprep.mubr.f32.mxu1 %v3162_v54 }
 0x155   :  { %2584 = vmatprep.subr.bf16.mxu1 %v2583_v59 }
 0x158   :  { %2586 = vmatpush3.bf16.msra.mxu1 %v2583_v59 }
 0x159   :  { %2588 = vmatprep.subr.bf16.mxu1 %v2587_v61 }
 0x15c   :  { %2590 = vmatpush3.bf16.msra.mxu1 %v2587_v61 }
 0x15d   :  { %2592 = vmatprep.subr.bf16.mxu1 %v2591_v27 }
 0x160   :  { %2594 = vmatpush3.bf16.msra.mxu1 %v2591_v27 }
 0x161   :  { %2596 = vmatprep.subr.bf16.mxu1 %v2595_v0 }
 0x164   :  { %2598 = vmatpush3.bf16.msra.mxu1 %v2595_v0 }
 0x165   :  { %2600 = vmatprep.subr.bf16.mxu1 %v2599_v62 }
 0x168   :  { %2602 = vmatpush3.bf16.msra.mxu1 %v2599_v62 }
 0x169   :  { %2604 = vmatprep.subr.bf16.mxu1 %v2603_v63 }
 0x16c   :  { %2606 = vmatpush3.bf16.msra.mxu1 %v2603_v63 }
 0x16d   :  { %2608 = vmatprep.subr.bf16.mxu1 %v2607_v3 }
 0x170   :  { %2610 = vmatpush3.bf16.msra.mxu1 %v2607_v3 }
 0x171   :  { %2612 = vmatprep.subr.bf16.mxu1 %v3061_v15 }
 0x173   :  { %2276 = vmatmul.mubr.f32.vlgmr.msra.gmra.mrb[0].mxu1 %v3160_v38 }
 0x174   :  { %2614 = vmatpush3.bf16.msra.mxu1 %v3061_v15  ;;  %2310 = vmatprep.mubr.f32.mxu1 %v3162_v54  ;;  %v1286_v15 = vand.u32 4294901760, %v1259_v36 }
 0x175   :  { %2616 = vmatprep.subr.bf16.mxu1 %v3071_v16 }
 0x176   :  { %v1388_v30 = vsub.f32 %v1259_v36, %v1286_v15 }
 0x178   :  { %2618 = vmatpush3.bf16.msra.mxu1 %v3071_v16  ;;  %v1289_v16 = vand.u32 4294901760, %v1260_v46  ;;  %v1389_v45 = vand.u32 4294901760, %v1388_v30 }
 0x179   :  { %2620 = vmatprep.subr.bf16.mxu1 %v3079_v7 }
 0x17a   :  { %v1395_v37 = vsub.f32 %v1260_v46, %v1289_v16  ;;  %v1390_v31 = vsub.f32 %v1388_v30, %v1389_v45 }
 0x17c   :  { %2622 = vmatpush3.bf16.msra.mxu1 %v3079_v7  ;;  %v3262_v7 = vpack.c.bf16 %v1289_v16, %v1286_v15  ;;  %v1391_v14 = vand.u32 4294901760, %v1390_v31  ;;  %v2679_v52 = vpack.c.bf16 %v1395_v37, %v1388_v30 }
 0x17d   :  { %2624 = vmatprep.subr.bf16.mxu1 %v3087_v8 }
 0x17e   :  { %2648 = vmatprep.subr.bf16.mxu0 %v3262_v7 }
 0x17f   :  { %2650 = vmatpush3.bf16.msra.mxu0 %v3262_v7 }
 0x180   :  { %2626 = vmatpush3.bf16.msra.mxu1 %v3087_v8  ;;  %v1261_v8 = vld [vmem:[%s3318_s5 + $0x20] sm:$0xff] }
 0x181   :  { %2628 = vmatprep.subr.bf16.mxu1 %v3095_v10 }
 0x184   :  { %2630 = vmatpush3.bf16.msra.mxu1 %v3095_v10  ;;  %v1262_v10 = vld [vmem:[%s3318_s5 + $0x28] sm:$0xff] }
 0x185   :  { %2632 = vmatprep.subr.bf16.mxu1 %v3101_v11  ;;  %v1295_v18 = vand.u32 4294901760, %v1262_v10 }
 0x187   :  { %v1409_v13 = vsub.f32 %v1262_v10, %v1295_v18 }
 0x188   :  { %2634 = vmatpush3.bf16.msra.mxu1 %v3101_v11  ;;  %v1292_v11 = vand.u32 4294901760, %v1261_v8 }
 0x189   :  { %2636 = vmatprep.subr.bf16.mxu1 %v3145_v5  ;;  %v1410_v23 = vand.u32 4294901760, %v1409_v13 }
 0x18a   :  { %v3272_v21 = vpack.c.bf16 %v1295_v18, %v1292_v11  ;;  %v1402_v12 = vsub.f32 %v1261_v8, %v1292_v11 }
 0x18b   :  { %v1411_v47 = vsub.f32 %v1409_v13, %v1410_v23 }
 0x18c   :  { %2638 = vmatpush3.bf16.msra.mxu1 %v3145_v5  ;;  %2652 = vmatprep.subr.bf16.mxu0 %v3272_v21  ;;  %v1301_v5 = vand.u32 4294901760, %v1264_v53  ;;  %v1403_v22 = vand.u32 4294901760, %v1402_v12  ;;  %v2683_v0 = vpack.c.bf16 %v1409_v13, %v1402_v12 }
 0x18d   :  { %2640 = vmatprep.subr.bf16.mxu1 %v3149_v6  ;;  %2654 = vmatpush3.bf16.msra.mxu0 %v3272_v21  ;;  %v1412_v59 = vand.u32 4294901760, %v1411_v47 }
 0x18e   :  { %v3282_v50 = vpack.c.bf16 %v1301_v5, %v1298_v4  ;;  %v1404_v29 = vsub.f32 %v1402_v12, %v1403_v22  ;;  %v1423_v40 = vsub.f32 %v1264_v53, %v1301_v5  ;;  %v2715_v51 = vpack.c.bf16 %v1410_v23, %v1403_v22 }
 0x190   :  { %2642 = vmatpush3.bf16.msra.mxu1 %v3149_v6  ;;  %v1375_v6 = vand.u32 4294901760, %v1374_v24  ;;  %2656 = vmatprep.subr.bf16.mxu0 %v3282_v50  ;;  %v1405_v48 = vand.u32 4294901760, %v1404_v29  ;;  %v1424_v57 = vand.u32 4294901760, %v1423_v40  ;;  %v2687_v62 = vpack.c.bf16 %v1423_v40, %v1416_v35 }
 0x191   :  { %2658 = vmatpush3.bf16.msra.mxu0 %v3282_v50 }
 0x192   :  { %v1376_v2 = vsub.f32 %v1374_v24, %v1375_v6  ;;  %v1425_v19 = vsub.f32 %v1423_v40, %v1424_v57  ;;  %v2667_v61 = vpack.c.bf16 %v1412_v59, %v1405_v48  ;;  %v2707_v63 = vpack.c.bf16 %v1382_v43, %v1375_v6 }
 0x193   :  { %2311 = vmatmul.mubr.f32.vlgmr.msra.gmra.mrb[0].mxu1 %v3160_v38  ;;  %v1396_v38 = vand.u32 4294901760, %v1395_v37  ;;  %v2719_v9 = vpack.c.bf16 %v1424_v57, %v1417_v56 }
 0x194   :  { %v1377_v44 = vand.u32 4294901760, %v1376_v2  ;;  %v1426_v26 = vand.u32 4294901760, %v1425_v19 }
 0x195   :  { %v1397_v58 = vsub.f32 %v1395_v37, %v1396_v38  ;;  %v2711_v3 = vpack.c.bf16 %v1396_v38, %v1389_v45 }
 0x196   :  { %v2659_v54 = vpack.c.bf16 %v1384_v34, %v1377_v44  ;;  %v2671_v27 = vpack.c.bf16 %v1426_v26, %v1419_v20 }
 0x197   :  { %v1398_v17 = vand.u32 4294901760, %v1397_v58 }
 0x198   :  { %2660 = vmatprep.subr.bf16.mxu0 %v2659_v54 }
 0x199   :  { %v2663_v28 = vpack.c.bf16 %v1398_v17, %v1391_v14 }
 0x1ee   :  { %v2137_v41 = vpop.f32.mrb[2].mxu0 }
 0x1ef   :  { %v658_v55 = vpop.f32.mrb[3].mxu0  ;;  %v669_v33 = vadd.f32 %v2137_v41, %v1867_v32 }
 0x1f0   :  { %v659_v36 = vadd.f32 %v1867_v32, %v658_v55  ;;  %v1868_v55 = vld [vmem:[%s3320_s6] ss:$0 sm:$0xff] }
 0x266   :  { %v2312_v46 = vpop.f32.mrb[0].mxu1 }
 0x267   :  { %v2742_v15 = vadd.f32 %v2312_v46, %v669_v33  ;;  %v1245_v16 = vpop.f32.mrb[1].mxu1 }
 0x268   :  { %v2744_v8 = vadd.f32 %v1245_v16, %v659_v36 }
 0x269   :  { %v1256_v10 = vmax.f32 %v2742_v15, 0.0 }
 0x26a   :  { %v1255_v11 = vmax.f32 %v2744_v8, 0.0 }
 0x26b   :  { %v1277_v18 = vsel %vm1272_vm1, %v1256_v10, 0 }
 0x26c   :  { %v1362_v24 = vand.u32 4294901760, %v1277_v18  ;;  %v1274_v25 = vsel %vm1272_vm1, %v1255_v11, 0 }
 0x26d   :  { %v1352_v42 = vand.u32 4294901760, %v1274_v25 }
 0x26e   :  { %v1363_v53 = vsub.f32 %v1277_v18, %v1362_v24 }
 0x26f   :  { %v1353_v4 = vsub.f32 %v1274_v25, %v1352_v42 }
 0x270   :  { %v1364_v5 = vand.u32 4294901760, %v1363_v53 }
 0x271   :  { %v1354_v6 = vand.u32 4294901760, %v1353_v4 }
 0x272   :  { %v1365_v43 = vsub.f32 %v1363_v53, %v1364_v5 }
 0x273   :  { %v1355_v2 = vsub.f32 %v1353_v4, %v1354_v6 }
 0x274   :  { %v1366_v41 = vand.u32 4294901760, %v1365_v43 }
 0x275   :  { %v1356_v1 = vand.u32 4294901760, %v1355_v2 }
 0x277   :  { %2329 = vmatprep.mubr.f32.mxu0 %v1356_v1 }
 0x278   :  { %2330 = vmatmul.mubr.f32.vlgmr.msra.gmra.mrb[4].mxu0 %v1366_v41 }
 0x279   :  { %2662 = vmatpush3.bf16.msra.mxu0 %v2659_v54  ;;  %2348 = vmatprep.mubr.f32.mxu0 %v1352_v42 }
 0x27a   :  { %2664 = vmatprep.subr.bf16.mxu0 %v2663_v28 }
 0x27d   :  { %2666 = vmatpush3.bf16.msra.mxu0 %v2663_v28 }
 0x27e   :  { %2668 = vmatprep.subr.bf16.mxu0 %v2667_v61 }
 0x281   :  { %2670 = vmatpush3.bf16.msra.mxu0 %v2667_v61 }
 0x282   :  { %2672 = vmatprep.subr.bf16.mxu0 %v2671_v27 }
 0x285   :  { %2674 = vmatpush3.bf16.msra.mxu0 %v2671_v27 }
 0x286   :  { %2676 = vmatprep.subr.bf16.mxu0 %v2675_v39 }
 0x288   :  { %2349 = vmatmul.mubr.f32.vlgmr.msra.gmra.mrb[4].mxu0 %v1362_v24 }
 0x289   :  { %2678 = vmatpush3.bf16.msra.mxu0 %v2675_v39  ;;  %2367 = vmatprep.mubr.f32.mxu0 %v1353_v4 }
 0x28a   :  { %2680 = vmatprep.subr.bf16.mxu0 %v2679_v52 }
 0x28d   :  { %2682 = vmatpush3.bf16.msra.mxu0 %v2679_v52 }
 0x28e   :  { %2684 = vmatprep.subr.bf16.mxu0 %v2683_v0 }
 0x291   :  { %2686 = vmatpush3.bf16.msra.mxu0 %v2683_v0 }
 0x292   :  { %2688 = vmatprep.subr.bf16.mxu0 %v2687_v62 }
 0x295   :  { %2690 = vmatpush3.bf16.msra.mxu0 %v2687_v62 }
 0x296   :  { %2692 = vmatprep.subr.bf16.mxu0 %v3252_v49 }
 0x298   :  { %2368 = vmatmul.mubr.f32.vlgmr.msra.gmra.mrb[4].mxu0 %v1363_v53 }
 0x299   :  { %2694 = vmatpush3.bf16.msra.mxu0 %v3252_v49  ;;  %2386 = vmatprep.mubr.f32.mxu0 %v1354_v6 }
 0x29a   :  { %2696 = vmatprep.subr.bf16.mxu0 %v3262_v7 }
 0x29d   :  { %2698 = vmatpush3.bf16.msra.mxu0 %v3262_v7 }
 0x29e   :  { %2700 = vmatprep.subr.bf16.mxu0 %v3272_v21 }
 0x2a1   :  { %2702 = vmatpush3.bf16.msra.mxu0 %v3272_v21 }
 0x2a2   :  { %2704 = vmatprep.subr.bf16.mxu0 %v3282_v50 }
 0x2a5   :  { %2706 = vmatpush3.bf16.msra.mxu0 %v3282_v50 }
 0x2a6   :  { %2708 = vmatprep.subr.bf16.mxu0 %v2707_v63 }
 0x2a8   :  { %2387 = vmatmul.mubr.f32.vlgmr.msra.gmra.mrb[4].mxu0 %v1364_v5 }
 0x2a9   :  { %2710 = vmatpush3.bf16.msra.mxu0 %v2707_v63  ;;  %2405 = vmatprep.mubr.f32.mxu0 %v1352_v42 }
 0x2aa   :  { %2712 = vmatprep.subr.bf16.mxu0 %v2711_v3 }
 0x2ad   :  { %2714 = vmatpush3.bf16.msra.mxu0 %v2711_v3 }
 0x2ae   :  { %2716 = vmatprep.subr.bf16.mxu0 %v2715_v51 }
 0x2b1   :  { %2718 = vmatpush3.bf16.msra.mxu0 %v2715_v51 }
 0x2b2   :  { %2720 = vmatprep.subr.bf16.mxu0 %v2719_v9 }
 0x2b5   :  { %2722 = vmatpush3.bf16.msra.mxu0 %v2719_v9 }
 0x2b6   :  { %2724 = vmatprep.subr.bf16.mxu0 %v3252_v49 }
 0x2b8   :  { %2406 = vmatmul.mubr.f32.vlgmr.msra.gmra.mrb[4].mxu0 %v1362_v24 }
 0x2b9   :  { %2726 = vmatpush3.bf16.msra.mxu0 %v3252_v49  ;;  %2424 = vmatprep.mubr.f32.mxu0 %v1352_v42 }
 0x2ba   :  { %2728 = vmatprep.subr.bf16.mxu0 %v3262_v7 }
 0x2bd   :  { %2730 = vmatpush3.bf16.msra.mxu0 %v3262_v7 }
 0x2be   :  { %2732 = vmatprep.subr.bf16.mxu0 %v3272_v21 }
 0x2c1   :  { %2734 = vmatpush3.bf16.msra.mxu0 %v3272_v21 }
 0x2c2   :  { %2736 = vmatprep.subr.bf16.mxu0 %v3282_v50 }
 0x2c5   :  { %2738 = vmatpush3.bf16.msra.mxu0 %v3282_v50 }
 0x2c8   :  { %2425 = vmatmul.mubr.f32.vlgmr.msra.gmra.mrb[4].mxu0 %v1362_v24 }
 0x39b   :  { %v2426_v30 = vpop.f32.mrb[4].mxu0 }
 0x39c   :  { %v2745_v49 = vadd.f32 %v2426_v30, %v1868_v55  ;;  %v1849_v37 = vpop.f32.mrb[5].mxu0 }
 0x39d   :  { %v2746_v44 = vadd.f32 %v1868_v55, %v1849_v37 }
 0x39e   :  { %1861 = vst.msk [vmem:[%s3321_s7 + $0x8] sm:$0xff] %vm1859_vm2, %v2745_v49 }
 0x39f   :  { %1860 = vst.msk [vmem:[%s3321_s7] sm:$0xff] %vm1859_vm2, %v2746_v44 }

</bundles_post_ra>
